<compile_context>
chip_gen: v7x
topology: tpu7x:2x2x1
jax: 0.10.0
libtpu: 0.0.40
codegen_flags: <defaults>
</compile_context>

<pallas_src>
import jax
import jax.numpy as jnp
from jax.experimental import pallas as pl
from jax.experimental.pallas import tpu as pltpu


def self_attn_kernel(x_ref, w_ref, b_ref, o_ref):
    # x_ref: (Bb, T, D) VMEM, w_ref: (1, D) VMEM, b_ref: (1,) SMEM, o_ref: (Bb, D)
    x = x_ref[...].astype(jnp.float32)   # no-op for f32 inputs; upcast if bf16
    w = w_ref[...].astype(jnp.float32)   # (1, D)
    b = b_ref[0]                         # scalar bias from SMEM

    # scorer(inp): lane-dense (Bb, T) scores via VPU multiply + lane reduce over D.
    s = jnp.sum(x * w[None, :, :], axis=-1) + b          # (Bb, T)

    # softmax over the sequence axis (last / lane axis), max-subtracted.
    m = jnp.max(s, axis=-1, keepdims=True)               # (Bb, 1)
    e = jnp.exp(s - m)                                    # (Bb, T)
    # exact reciprocal: keeps results within the 1e-5 reference tolerance
    p = e * pl.reciprocal(jnp.sum(e, axis=-1, keepdims=True), approx=False)

    # scores^T @ inp, batched over Bb: VPU broadcast-mul + sublane reduce over T.
    cont = jnp.sum(p[:, :, None] * x, axis=1)             # (Bb, D), f32 accumulation
    o_ref[...] = cont.astype(o_ref.dtype)


def self_attn(inp, w, b, *, block_b=None, vmem_limit_bytes=48 * 1024 * 1024):
    """SelfAttn forward.

    inp: (B, T, D); w: (1, D)  (nn.Linear(dhid, 1).weight layout); b: (1,)
    returns: (B, D)
    """
    B, T, D = inp.shape
    assert w.shape == (1, D) and b.shape == (1,)

    if block_b is None:
        # Per-batch-row footprint: streamed input block (double-buffered by the
        # pipeline) plus ~2 block-sized f32 temporaries inside the kernel body.
        per_row = T * D * (inp.dtype.itemsize + 2 * 4)
        block_b = max(1, (8 * 1024 * 1024) // per_row)    # ~8 MiB per input buffer

    if block_b >= B:
        block_b = B                                       # full-dim block: always legal
    else:
        # Output block is (Bb, D): keep its second-to-last dim sublane aligned.
        block_b = min(max(8, (block_b // 8) * 8), B)

    grid_b = pl.cdiv(B, block_b)

    return pl.pallas_call(
        self_attn_kernel,
        out_shape=jax.ShapeDtypeStruct((B, D), inp.dtype),
        grid_spec=pltpu.PrefetchScalarGridSpec(
            num_scalar_prefetch=0,
            grid=(grid_b,),
            in_specs=[
                pl.BlockSpec((block_b, T, D), lambda i: (i, 0, 0)),
                pl.BlockSpec((1, D), lambda i: (0, 0)),                 # lane-dense weight
                pl.BlockSpec(memory_space=pltpu.MemorySpace.SMEM),      # scalar bias
            ],
            out_specs=pl.BlockSpec((block_b, D), lambda i: (i, 0)),     # direct (B, D) output
        ),
        compiler_params=pltpu.CompilerParams(
            dimension_semantics=("parallel",),            # megacore split over batch
            vmem_limit_bytes=vmem_limit_bytes,            # safe on v5e/v6e/v7x
        ),
    )(inp, w, b)


if __name__ == "__main__":
    B, T, D = 2, 8, 32  # batch, seq, dhid

    key = jax.random.PRNGKey(0)
    k_x, k_w, k_b = jax.random.split(key, 3)

    # Deterministic parameter init mimicking nn.Linear(dhid, 1):
    # uniform(-1/sqrt(dhid), 1/sqrt(dhid)) for weight (1, D) and bias (1,).
    bound = 1.0 / (D ** 0.5)
    w = jax.random.uniform(k_w, (1, D), jnp.float32, -bound, bound)
    b = jax.random.uniform(k_b, (1,), jnp.float32, -bound, bound)

    inp = jax.random.normal(k_x, (B, T, D), jnp.float32)

    out = jax.block_until_ready(self_attn(inp, w, b))

    # Pure-JAX reference check
    logits = jnp.einsum("btd,od->bto", inp, w) + b        # (B, T, 1)
    scores = jax.nn.softmax(logits, axis=1)
    ref = jnp.einsum("bto,btd->bd", scores, inp)          # (B, D)
    assert out.shape == (B, D)
    assert jnp.allclose(out, ref, atol=1e-5, rtol=1e-5), "mismatch vs reference"

    print("KERNEL_OK")
</pallas_src>

<mosaic_0001>
module attributes {stable_mosaic.version = 11 : i64} {
  func.func @self_attn_kernel(%arg0: i32, %arg1: memref<2x8x32xf32, #tpu.memory_space<vmem>>, %arg2: memref<1x32xf32, #tpu.memory_space<vmem>>, %arg3: memref<1xf32, #tpu.memory_space<smem>>, %arg4: memref<2x32xf32, #tpu.memory_space<vmem>>) attributes {dimension_semantics = [#tpu.dimension_semantics<parallel>], iteration_bounds = array<i64: 1>, scalar_prefetch = 0 : i64, scratch_operands = 0 : i64, tpu.core_type = #tpu.core_type<tc>, window_params = [{transform_indices = @transform_0, window_bounds = array<i64: 2, 8, 32>}, {pipeline_mode = #tpu.pipeline_mode<synchronous>, transform_indices = @transform_1, window_bounds = array<i64: 1, 32>}, {transform_indices = @transform_2, window_bounds = array<i64: 1>}, {transform_indices = @transform_3, window_bounds = array<i64: 2, 32>}]} {
    %c0 = arith.constant 0 : index
    %c0_0 = arith.constant 0 : index
    %c0_1 = arith.constant 0 : index
    %0 = vector.load %arg1[%c0, %c0_0, %c0_1] : memref<2x8x32xf32, #tpu.memory_space<vmem>>, vector<2x8x32xf32>
    %c0_2 = arith.constant 0 : index
    %c0_3 = arith.constant 0 : index
    %1 = vector.load %arg2[%c0_2, %c0_3] : memref<1x32xf32, #tpu.memory_space<vmem>>, vector<1x32xf32>
    %c0_4 = arith.constant 0 : index
    %2 = memref.load %arg3[%c0_4] : memref<1xf32, #tpu.memory_space<smem>>
    %3 = vector.shape_cast %1 : vector<1x32xf32> to vector<1x1x32xf32>
    %4 = vector.broadcast %3 : vector<1x1x32xf32> to vector<2x8x32xf32>
    %5 = arith.mulf %0, %4 : vector<2x8x32xf32>
    %cst = arith.constant dense<0.000000e+00> : vector<2x8xf32>
    %6 = vector.multi_reduction <add>, %5, %cst [2] : vector<2x8x32xf32> to vector<2x8xf32>
    %7 = vector.broadcast %2 : f32 to vector<2x8xf32>
    %8 = arith.addf %6, %7 : vector<2x8xf32>
    %cst_5 = arith.constant dense<0xFF800000> : vector<2xf32>
    %9 = vector.multi_reduction <maximumf>, %8, %cst_5 [1] : vector<2x8xf32> to vector<2xf32>
    %10 = vector.shape_cast %9 : vector<2xf32> to vector<2x1xf32>
    %11 = vector.broadcast %10 : vector<2x1xf32> to vector<2x8xf32>
    %12 = arith.subf %8, %11 : vector<2x8xf32>
    %13 = math.exp %12 : vector<2x8xf32>
    %cst_6 = arith.constant dense<0.000000e+00> : vector<2xf32>
    %14 = vector.multi_reduction <add>, %13, %cst_6 [1] : vector<2x8xf32> to vector<2xf32>
    %15 = vector.shape_cast %14 : vector<2xf32> to vector<2x1xf32>
    %16 = tpu.reciprocal %15 : vector<2x1xf32> -> vector<2x1xf32>
    %17 = vector.broadcast %16 : vector<2x1xf32> to vector<2x8xf32>
    %18 = arith.mulf %13, %17 : vector<2x8xf32>
    %19 = vector.shape_cast %18 : vector<2x8xf32> to vector<2x8x1xf32>
    %20 = vector.broadcast %19 : vector<2x8x1xf32> to vector<2x8x32xf32>
    %21 = arith.mulf %20, %0 : vector<2x8x32xf32>
    %cst_7 = arith.constant dense<0.000000e+00> : vector<2x32xf32>
    %22 = vector.multi_reduction <add>, %21, %cst_7 [1] : vector<2x8x32xf32> to vector<2x32xf32>
    %c0_8 = arith.constant 0 : index
    %c0_9 = arith.constant 0 : index
    %23 = vector.load %arg4[%c0_8, %c0_9] : memref<2x32xf32, #tpu.memory_space<vmem>>, vector<2x32xf32>
    tpu.vector_store %arg4[%c0_8, %c0_9], %22 {strides = array<i32>} : memref<2x32xf32, #tpu.memory_space<vmem>>, vector<2x32xf32>,
    return
  }
  func.func @transform_0(%arg0: i32) -> (i32, i32, i32) {
    %c0_i32 = arith.constant 0 : i32
    %c0_i32_0 = arith.constant 0 : i32
    %c0_i32_1 = arith.constant 0 : i32
    return %arg0, %c0_i32, %c0_i32_0 : i32, i32, i32
  }
  func.func @transform_1(%arg0: i32) -> (i32, i32) {
    %c0_i32 = arith.constant 0 : i32
    %c0_i32_0 = arith.constant 0 : i32
    %c0_i32_1 = arith.constant 0 : i32
    return %c0_i32, %c0_i32_0 : i32, i32
  }
  func.func @transform_2(%arg0: i32) -> i32 {
    %c0_i32 = arith.constant 0 : i32
    %c0_i32_0 = arith.constant 0 : i32
    return %c0_i32 : i32
  }
  func.func @transform_3(%arg0: i32) -> (i32, i32) {
    %c0_i32 = arith.constant 0 : i32
    %c0_i32_0 = arith.constant 0 : i32
    return %arg0, %c0_i32 : i32, i32
  }
}

</mosaic_0001>

<bundles_post_ra>
// kernel: tpu_custom_call.1
= control target key start
LH: loop header
LB: loop body
LE: loop exit
PB: predicated region body
PF: predicated region fallthrough
CT: control target
= control target key end

     0   :  { %9 = vsyncpa [#allocation4], 0  ;;  %s296_s0 = inlined_call_operand.hbm [shape: f32[2,8,32], index: 0, kind: input, shape index: {}]   ;;  %s297_s1 = inlined_call_operand.vmem [shape: f32[1,32], index: 1, kind: input, shape index: {}]   ;;  %s298_s2 = inlined_call_operand.<no memory space> [shape: f32[1], index: 2, kind: input, shape index: {}]   ;;  %s299_s3 = inlined_call_operand.hbm [shape: f32[2,32], index: 3, kind: output, shape index: {}]  }
   0x1   :  { %10 = vsyncpa [#allocation5], 0  ;;  %s232_s12 = smov [#allocation3]   ;;  %s184_s16 = scalar_lea.hbm %s296_s0, 256 }
   0x2   :  { %s16_s13 = sshll.u32 %s232_s12, 4  ;;  %p185_p0 = scmp.ne.s32.totalorder %s296_s0, %s184_s16  ;;  %s17_s13 = int_to_ptr.vmem [resolvable:$true] %s16_s13 }
   0x3   :  { %p188_p1 = scmp.lt.u32.totalorder %s184_s16, %s296_s0 }
   0x5   :  { %p190_p2 = pnand %p188_p1, %p185_p0 }
   0x7   :  { %193 = shalt.err (!%p190_p2)
}
   0x8   :  { %s194_s21 = scalar_lea.vmem %s17_s13, 256  ;;  %p199_p4 = scmp.lt.s32.totalorder %s17_s13, %s17_s13 }
   0x9   :  { %p195_p3 = scmp.ne.s32.totalorder %s17_s13, %s194_s21  ;;  %p200_p5 = scmp.lt.s32.totalorder %s194_s21, %s194_s21 }
   0xb   :  { %p201_p6 = por %p200_p5, %p199_p4 }
   0xd   :  { %p202_p7 = pnand %p201_p6, %p195_p3 }
   0xf   :  { %205 = shalt.err (!%p202_p7)
}
  0x10   :  { %s233_s22 = smov 128   ;;  %s234_s23 = smov 8  }
  0x11   :  { %22 = dma.hbm_to_vmem [thread:$0]  %s296_s0, 256, %s17_s13, [#allocation4], %s233_s22, %s233_s22, %s234_s23  }
  0x12   :  { %228 = dma.done.wait [#allocation4], 256  }
  0x13   :  { %229 = vsyncadd [#allocation4], 4294967040  ;;  %v30_v0 = vld [vmem:[#allocation3] sm:$0xff]  ;;  %vm42_vm0 = vcmask 261120   ;;  %v31_v2 = vld [vmem:[#allocation3 + $0x8] sm:$0xff]  ;;  %v54_v7 = vlaneseq  ;;  %v49_v10 = vstv %s298_s2  ;;  %vm64_vm1 = vcmask 1041409  }
  0x14   :  { %v170_v1 = vld [vmem:[%s297_s1] ss:$0 sm:$0xff]  ;;  %vm67_vm2 = vcmask 58368   ;;  %v235_v20 = vmov 0   ;;  %s236_s1 = smov [#allocation6]   ;;  %vm153_vm3 = vcmask 254976  }
  0x15   :  { %v40_v3 = vmul.f32 %v170_v1, %v30_v0  ;;  %v41_v4 = vmul.f32 %v170_v1, %v31_v2  ;;  %v55_v8 = vand.u32 127, %v54_v7  ;;  %v57_v9 = vshrl.u32 %v54_v7, 7  ;;  %177 = vset.pattern.permute.xlu0 %v235_v20  ;;  %176 = vset.pattern.permute.xlu1 %v235_v20  ;;  %s161_s2 = sshll.u32 %s236_s1, 4  ;;  %s162_s2 = int_to_ptr.vmem [resolvable:$true] %s161_s2 }
  0x16   :  { %s206_s29 = scalar_lea.vmem %s162_s2, 32  ;;  %p211_p9 = scmp.lt.s32.totalorder %s162_s2, %s162_s2 }
  0x17   :  { %v43_v5 = vsel %vm42_vm0, %v40_v3, 0.0  ;;  %v46_v6 = vsel %vm42_vm0, %v41_v4, 0.0  ;;  %v58_v12 = vsub.s32 %v55_v8, %v57_v9  ;;  %v74_v21 = vsub.s32 0, %v57_v9  ;;  %p207_p8 = scmp.ne.s32.totalorder %s162_s2, %s206_s29  ;;  %p212_p10 = scmp.lt.s32.totalorder %s206_s29, %s206_s29 }
  0x18   :  { %44 = vadd.xlane.f32.xlu0 %v43_v5  ;;  %v78_v22 = vsub.s32 1, %v57_v9 }
  0x19   :  { %p213_p11 = por %p212_p10, %p211_p9 }
  0x1b   :  { %p214_p12 = pnand %p213_p11, %p207_p8 }
  0x1c   :  { %47 = vadd.xlane.f32.xlu0 %v46_v6 }
  0xa5   :  { %v45_v11 = vpop.xlane.xlu0 %44 }
  0xa6   :  { %v50_v13 = vadd.f32 %v49_v10, %v45_v11 }
  0xa8   :  { %v59_v16 = vrot.slane %v50_v13, %v58_v12 }
  0xa9   :  { %v48_v14 = vpop.xlane.xlu0 %47 }
  0xaa   :  { %v51_v15 = vadd.f32 %v49_v10, %v48_v14 }
  0xac   :  { %v63_v17 = vrot.slane %v51_v15, %v58_v12 }
  0xae   :  { %v65_v18 = vsel %vm64_vm1, %v63_v17, %v59_v16 }
  0xaf   :  { %v68_v19 = vsel %vm67_vm2, %v65_v18, -inf }
  0xb0   :  { %69 = vmax.xlane.f32.xlu1 %v68_v19 }
 0x13d   :  { %v70_v23 = vpop.xlane.xlu1 %69 }
 0x13e   :  { %v75_v24 = vrot.slane %v70_v23, %v74_v21  ;;  %v79_v25 = vrot.slane %v70_v23, %v78_v22 }
 0x140   :  { %v82_v26 = vsub.f32 %v50_v13, %v75_v24  ;;  %v83_v27 = vsub.f32 %v51_v15, %v79_v25 }
 0x142   :  { %v84_v28 = vmul.f32 1.442695, %v82_v26  ;;  %v86_v29 = vmul.f32 1.442695, %v83_v27 }
 0x144   :  { %178 = vpow2.f32 %v84_v28 }
 0x145   :  { %180 = vpow2.f32 %v86_v29 }
 0x14e   :  { %v179_v30 = vpop.eup %178 }
 0x14f   :  { %v181_v31 = vpop.eup %180  ;;  %91 = vperm.xlu1 %176, %v179_v30  }
 0x150   :  { %94 = vperm.xlu0 %177, %v181_v31  }
 0x1ce   :  { %v92_v32 = vpop.permute.xlu1 %91 }
 0x1cf   :  { %v95_v33 = vpop.permute.xlu0 %94  ;;  %v99_v34 = vrot.slane %v92_v32, %v58_v12 }
 0x1d0   :  { %v103_v35 = vrot.slane %v95_v33, %v58_v12 }
 0x1d2   :  { %v104_v36 = vsel %vm64_vm1, %v103_v35, %v99_v34 }
 0x1d3   :  { %v106_v37 = vsel %vm67_vm2, %v104_v36, 0.0 }
 0x1d4   :  { %107 = vadd.xlane.f32.xlu1 %v106_v37 }
 0x261   :  { %v108_v38 = vpop.xlane.xlu1 %107 }
 0x262   :  { %182 = vrcp.f32 %v108_v38 }
 0x26c   :  { %v183_v39 = vpop.eup %182 }
 0x26d   :  { %v114_v40 = vrot.slane %v183_v39, %v74_v21  ;;  %v118_v42 = vrot.slane %v183_v39, %v78_v22 }
 0x26f   :  { %v121_v41 = vmul.f32 %v179_v30, %v114_v40  ;;  %v122_v43 = vmul.f32 %v181_v31, %v118_v42 }
 0x271   :  { %125 = vperm.xlu0 %177, %v121_v41  }
 0x275   :  { %130 = vperm.xlu0 %177, %v122_v43  }
 0x2f0   :  { %v126_v44 = vpop.permute.xlu0 %125 }
 0x2f1   :  { %v133_v45 = vmul.f32 %v126_v44, %v30_v0 }
 0x2f3   :  { %v135_v46 = vsel %vm42_vm0, %v133_v45, 0.0 }
 0x2f4   :  { %v136_v47 = vrot.slane %v135_v46, 4  ;;  %v131_v48 = vpop.permute.xlu0 %130 }
 0x2f5   :  { %v134_v49 = vmul.f32 %v131_v48, %v31_v2 }
 0x2f6   :  { %v137_v50 = vadd.f32 %v136_v47, %v135_v46 }
 0x2f7   :  { %v142_v51 = vsel %vm42_vm0, %v134_v49, 0.0 }
 0x2f8   :  { %v138_v52 = vrot.slane %v137_v50, 2  ;;  %v143_v53 = vrot.slane %v142_v51, 4 }
 0x2fa   :  { %v139_v54 = vadd.f32 %v138_v52, %v137_v50  ;;  %v144_v55 = vadd.f32 %v143_v53, %v142_v51 }
 0x2fc   :  { %v145_v56 = vrot.slane %v144_v55, 2  ;;  %v140_v57 = vrot.slane %v139_v54, 1 }
 0x2fe   :  { %v146_v58 = vadd.f32 %v145_v56, %v144_v55  ;;  %v141_v60 = vadd.f32 %v140_v57, %v139_v54 }
 0x300   :  { %v147_v59 = vrot.slane %v146_v58, 1 }
 0x302   :  { %v148_v61 = vadd.f32 %v147_v59, %v146_v58 }
 0x304   :  { %v151_v62 = vsel %vm64_vm1, %v148_v61, %v141_v60 }
 0x305   :  { %154 = vst.msk [vmem:[#allocation6] sm:$0x3] %vm153_vm3, %v151_v62 }
 0x306   :  { %217 = shalt.err (!%p214_p12)
}
 0x307   :  { %s218_s5 = scalar_lea.hbm %s299_s3, 32 }
 0x308   :  { %p219_p13 = scmp.ne.s32.totalorder %s299_s3, %s218_s5  ;;  %p222_p0 = scmp.lt.u32.totalorder %s218_s5, %s299_s3 }
 0x30a   :  { %p224_p1 = pnand %p222_p0, %p219_p13 }
 0x30c   :  { %227 = shalt.err (!%p224_p1)
}
 0x30d   :  { %164 = dma.vmem_to_hbm [thread:$0]  %s162_s2, 32, %s299_s3, [#allocation5]  }
 0x30e   :  { %230 = dma.done.wait [#allocation5], 32  }
 0x30f   :  { %231 = vsyncadd [#allocation5], 4294967264 }
 0x310   :  { %168 = vsyncpa [#allocation4], 1 }
 0x311   :  { %169 = vsyncpa [#allocation5], 1 }

</bundles_post_ra>
